<compile_context>
chip_gen: v7x
topology: tpu7x:2x2x1
jax: 0.10.0
libtpu: 0.0.40
codegen_flags: <defaults>
</compile_context>

<pallas_src>
import math

import jax
import jax.numpy as jnp
from jax.experimental import pallas as pl
from jax.experimental.pallas import tpu as pltpu

KERNEL = 3
STRIDE = 3  # MaxPool2d default: stride = kernel_size


def _ceil_out_size(size: int, k: int, s: int) -> int:
    # PyTorch ceil_mode=True, padding=0
    out = math.ceil((size - k) / s) + 1
    if (out - 1) * s >= size:  # drop last window if it would start outside the input
        out -= 1
    return out


def _pad_value(dtype):
    if jnp.issubdtype(dtype, jnp.floating):
        return -jnp.inf
    return jnp.iinfo(dtype).min


def _padded_channel_bytes(h: int, w: int, dtype) -> int:
    """Real VMEM footprint of one (h, w) channel slice after (sublane, 128-lane)
    tiling: lanes round up to 128, sublanes to 8 (f32) / 16 (bf16) / 32 (int8)."""
    itemsize = jnp.dtype(dtype).itemsize
    sublane = max(8, 32 // itemsize)
    rows = -(-h // sublane) * sublane
    cols = -(-w // 128) * 128
    return rows * cols * itemsize


def _pick_block_channels(nc: int, padded_bytes_per_channel: int,
                         target_bytes: int = 4 << 20) -> int:
    """Largest divisor of nc whose *padded* input block stays under target_bytes,
    preferring >=4 grid steps, then >=2, then any."""
    divisors = [d for d in range(1, nc + 1) if nc % d == 0]
    for min_steps in (4, 2, 1):
        cands = [d for d in divisors
                 if d * padded_bytes_per_channel <= target_bytes
                 and nc // d >= min_steps]
        if cands:
            return max(cands)
    # Even a single channel exceeds the target: still correct, just one big block.
    # TODO(synk): add a second row-tiling grid axis for very large single channels.
    return 1


def _make_maxpool_kernel(h: int, w: int, out_h: int, out_w: int, pad_val):
    hp = out_h * STRIDE
    wp = out_w * STRIDE
    r_h = hp - h  # 0..2 ragged rows required by ceil_mode
    r_w = wp - w  # 0..2 ragged cols

    def kernel(x_ref, o_ref):
        bc = x_ref.shape[0]
        x = x_ref[...]  # (bc, h, w); max is exact in the input dtype
        # Ceil-mode edge handling in VMEM (no extra HBM pad pass).  The drop-last-
        # window rule guarantees every kept window still holds >=1 real element,
        # so the minimum fill never leaks into the output.
        if r_w:
            x = jnp.concatenate(
                [x, jnp.full((bc, h, r_w), pad_val, dtype=x.dtype)], axis=2)
        if r_h:
            x = jnp.concatenate(
                [x, jnp.full((bc, r_h, wp), pad_val, dtype=x.dtype)], axis=1)
        # H-window reduction: split the sublane axis into (out_h, 3) groups.
        rows = jnp.max(x.reshape(bc, out_h, STRIDE, wp), axis=2)      # (bc, out_h, wp)
        # W-window reduction: split only the lane axis into (out_w, 3); out_h stays on
        # sublanes, output stored in its natural (bc, out_h, out_w) layout.
        o_ref[...] = jnp.max(rows.reshape(bc, out_h, out_w, STRIDE), axis=3)

    return kernel


def maxpool2d_ceil(x: jax.Array) -> jax.Array:
    """MaxPool2d(kernel_size=3, stride=3, padding=0, ceil_mode=True) on NCHW input."""
    n, c, h, w = x.shape
    out_h = _ceil_out_size(h, KERNEL, STRIDE)
    out_w = _ceil_out_size(w, KERNEL, STRIDE)

    nc = n * c
    xf = x.reshape(nc, h, w)  # free reshape (contiguous); no HBM padding pass

    bc = _pick_block_channels(nc, _padded_channel_bytes(h, w, x.dtype))
    grid = (nc // bc,)

    kernel = _make_maxpool_kernel(h, w, out_h, out_w, _pad_value(x.dtype))

    out = pl.pallas_call(
        kernel,
        out_shape=jax.ShapeDtypeStruct((nc, out_h, out_w), x.dtype),
        grid_spec=pltpu.PrefetchScalarGridSpec(
            num_scalar_prefetch=0,
            grid=grid,
            # Last two block dims equal the full array dims -> always layout-legal.
            in_specs=[pl.BlockSpec((bc, h, w), lambda i: (i, 0, 0))],
            out_specs=pl.BlockSpec((bc, out_h, out_w), lambda i: (i, 0, 0)),
        ),
        compiler_params=pltpu.CompilerParams(
            dimension_semantics=("parallel",),
            # ~4 MiB padded input block x2 double-buffering + temporaries stays far
            # below 48 MiB; 48 MiB is safe on v7x's 64 MiB physical VMEM.
            vmem_limit_bytes=48 * 1024 * 1024,
        ),
    )(xf)

    return out.reshape(n, c, out_h, out_w)


def _reference_maxpool(x: jax.Array) -> jax.Array:
    """Pure-JAX reference for correctness checking."""
    n, c, h, w = x.shape
    out_h = _ceil_out_size(h, KERNEL, STRIDE)
    out_w = _ceil_out_size(w, KERNEL, STRIDE)
    hp, wp = out_h * STRIDE, out_w * STRIDE
    xp = jnp.pad(x, ((0, 0), (0, 0), (0, hp - h), (0, wp - w)),
                 constant_values=_pad_value(x.dtype))
    return jnp.max(xp.reshape(n, c, out_h, STRIDE, out_w, STRIDE), axis=(3, 5))


if __name__ == "__main__":
    key = jax.random.PRNGKey(0)
    # small NCHW batch: (N=2, C=4, H=16, W=16)
    x = jax.random.normal(key, (2, 4, 16, 16), dtype=jnp.float32)

    y = jax.block_until_ready(maxpool2d_ceil(x))

    # ceil_mode=True: 16 -> ceil((16-3)/3)+1 = 6
    assert y.shape == (2, 4, 6, 6), y.shape
    y_ref = _reference_maxpool(x)
    assert jnp.array_equal(y, y_ref), "Pallas maxpool mismatch vs reference"

    print("KERNEL_OK")
</pallas_src>

<mosaic_0001>
module attributes {stable_mosaic.version = 11 : i64} {
  func.func @kernel(%arg0: i32, %arg1: memref<2x16x16xf32, #tpu.memory_space<vmem>>, %arg2: memref<2x6x6xf32, #tpu.memory_space<vmem>>) attributes {dimension_semantics = [#tpu.dimension_semantics<parallel>], iteration_bounds = array<i64: 4>, scalar_prefetch = 0 : i64, scratch_operands = 0 : i64, tpu.core_type = #tpu.core_type<tc>, window_params = [{transform_indices = @transform_0, window_bounds = array<i64: 2, 16, 16>}, {transform_indices = @transform_1, window_bounds = array<i64: 2, 6, 6>}]} {
    %c0 = arith.constant 0 : index
    %c0_0 = arith.constant 0 : index
    %c0_1 = arith.constant 0 : index
    %0 = vector.load %arg1[%c0, %c0_0, %c0_1] : memref<2x16x16xf32, #tpu.memory_space<vmem>>, vector<2x16x16xf32>
    %cst = arith.constant 0xFF800000 : f32
    %1 = vector.broadcast %cst : f32 to vector<2x16x2xf32>
    %2 = tpu.concatenate %0, %1 in 2 : vector<2x16x16xf32>, vector<2x16x2xf32> -> vector<2x16x18xf32>
    %cst_2 = arith.constant 0xFF800000 : f32
    %3 = vector.broadcast %cst_2 : f32 to vector<2x2x18xf32>
    %4 = tpu.concatenate %2, %3 in 1 : vector<2x16x18xf32>, vector<2x2x18xf32> -> vector<2x18x18xf32>
    %5 = vector.shape_cast %4 : vector<2x18x18xf32> to vector<2x6x3x18xf32>
    %cst_3 = arith.constant dense<0xFF800000> : vector<2x6x18xf32>
    %6 = vector.multi_reduction <maximumf>, %5, %cst_3 [2] : vector<2x6x3x18xf32> to vector<2x6x18xf32>
    %7 = vector.shape_cast %6 : vector<2x6x18xf32> to vector<2x6x6x3xf32>
    %cst_4 = arith.constant dense<0xFF800000> : vector<2x6x6xf32>
    %8 = vector.multi_reduction <maximumf>, %7, %cst_4 [3] : vector<2x6x6x3xf32> to vector<2x6x6xf32>
    %c0_5 = arith.constant 0 : index
    %c0_6 = arith.constant 0 : index
    %c0_7 = arith.constant 0 : index
    %9 = vector.load %arg2[%c0_5, %c0_6, %c0_7] : memref<2x6x6xf32, #tpu.memory_space<vmem>>, vector<2x6x6xf32>
    tpu.vector_store %arg2[%c0_5, %c0_6, %c0_7], %8 {strides = array<i32>} : memref<2x6x6xf32, #tpu.memory_space<vmem>>, vector<2x6x6xf32>,
    return
  }
  func.func @transform_0(%arg0: i32) -> (i32, i32, i32) {
    %c0_i32 = arith.constant 0 : i32
    %c0_i32_0 = arith.constant 0 : i32
    %c0_i32_1 = arith.constant 0 : i32
    return %arg0, %c0_i32, %c0_i32_0 : i32, i32, i32
  }
  func.func @transform_1(%arg0: i32) -> (i32, i32, i32) {
    %c0_i32 = arith.constant 0 : i32
    %c0_i32_0 = arith.constant 0 : i32
    %c0_i32_1 = arith.constant 0 : i32
    return %arg0, %c0_i32, %c0_i32_0 : i32, i32, i32
  }
}

</mosaic_0001>

<bundles_post_ra>
// kernel: tpu_custom_call.1
= control target key start
LH: loop header
LB: loop body
LE: loop exit
PB: predicated region body
PF: predicated region fallthrough
CT: control target
= control target key end

     0   :  { %6 = vsyncpa [#allocation3], 0  ;;  %s2091_s0 = inlined_call_operand.hbm [shape: f32[8,16,16], index: 0, kind: input, shape index: {}]   ;;  %s2092_s1 = inlined_call_operand.vmem [shape: f32[8,6,6], index: 1, kind: output, shape index: {}]  }
   0x1   :  { %8 = vsyncpa [#allocation3 + $0x1], 0  ;;  %s1550_s6 = smov 0   ;;  %s1552_s7 = smov 0  }
   0x2   :  { %s1554_s8 = smov 0   ;;  %s1556_s9 = smov 0  }
   0x3 LB: > { %s1392_s10 = sadd.s32 4294967295, %s1526_s9   ;;  %s1570_s11 = sadd.s32 1, %s1526_s9   ;;  %s1526_s9 = sphi %s1556_s9, %s2099_s9   ;;  %s1522_s8 = sphi %s1554_s8, %s2098_s8   ;;  %s1518_s7 = sphi %s1552_s7, %s2097_s7   ;;  %s1514_s6 = sphi %s1550_s6, %s2096_s6  }
   0x4   : > { %s18_s12 = ssub.s32 %s1526_s9, %s1570_s11  ;;  %s21_s13 = sadd.s32 1, %s1522_s8 }
   0x5   : > { %p19_p0 = scmp.eq.s32.totalorder %s18_s12, 0  ;;  %p28_p1 = scmp.ne.s32.totalorder %s1522_s8, %s1518_s7 }
   0x6   : > { %p29_p2 = scmp.eq.s32.totalorder %s1526_s9, 0  ;;  %p34_p3 = scmp.ne.s32.totalorder %s1518_s7, %s1514_s6 }
   0x7   : > { %s1580_s14 = scalar_select %p19_p0, %s1522_s8, %s21_s13  }
   0x8   : > { %p30_p4 = por %p29_p2, %p28_p1  ;;  %p35_p5 = scmp.eq.s32.totalorder %s1392_s10, 0 }
   0x9   : > { %p1418_p6 = scmp.lt.s32.totalorder %s1526_s9, 4  ;;  %s84_s16 = sand.u32 1, %s1522_s8  }
   0xa   : > { %p1585_p7 = por %p35_p5, %p34_p3  ;;  %s1396_s17 = sshll.u32 %s84_s16, 5 }
   0xb   : > { %s1411_s18 = sshll.u32 %s1526_s9, 9  ;;  %s88_s22 = scalar_lea.vmem [#allocation2], %s1396_s17 }
   0xc   : > { %s1594_s21 = scalar_lea.hbm %s2091_s0, %s1411_s18  ;;  %s96_s23 = sshll.u32 %s88_s22, 4  ;;  %s1596_s23 = int_to_ptr.vmem [resolvable:$true] %s96_s23 }
   0xd   : > { %p1598_p8 = pnand %p1418_p6, %p30_p4  ;;  %s1603_s25 = scalar_lea.sflag [#allocation3], %s84_s16 }
   0xe   : > { %s1462_s26 = scalar_lea.hbm %s1594_s21, 512  ;;  %s1467_s29 = scalar_lea.hbm %s2091_s0, 2048 }
   0xf   : > { %p1463_p10 = scmp.ne.s32.totalorder %s1594_s21, %s1462_s26  ;;  %p1464_p11 = pneg %p1598_p8 }
  0x10   : > { %p1468_p0 = scmp.lt.u32.totalorder %s1594_s21, %s2091_s0  ;;  %p1469_p1 = scmp.lt.u32.totalorder %s1467_s29, %s1462_s26 }
  0x11   : > { %p1465_p12 = pnand %p1464_p11, %p1463_p10  ;;  %p1471_p3 = scmp.lt.u32.totalorder %s1462_s26, %s1594_s21 }
  0x12   : > { %p1470_p2 = por %p1469_p1, %p1468_p0 }
  0x13   : > { %p1466_p13 = pneg %p1465_p12 }
  0x14   : > { %p1472_p4 = por %p1471_p3, %p1470_p2 }
  0x16   : > { %p1473_p5 = pnand %p1472_p4, %p1466_p13 }
  0x18   : > { %1476 = shalt.err (!%p1473_p5)
}
  0x19   : > { %s1477_s3 = scalar_lea.vmem %s1596_s23, 512  ;;  %s1528_s4 = smov [#allocation2]  }
  0x1a   : > { %p1478_p6 = scmp.ne.s32.totalorder %s1596_s23, %s1477_s3  ;;  %s1482_s5 = sshll.u32 %s1528_s4, 4  ;;  %s1483_s5 = int_to_ptr.vmem [resolvable:$false] %s1482_s5 }
  0x1b   : > { %s1484_s6 = scalar_lea.vmem %s1483_s5, 1024  ;;  %p1485_p9 = scmp.lt.s32.totalorder %s1596_s23, %s1483_s5 }
  0x1c   : > { %p1480_p10 = pnand %p1478_p6, %p1464_p11  ;;  %p1486_p0 = scmp.lt.s32.totalorder %s1484_s6, %s1477_s3 }
  0x1e   : > { %p1481_p12 = pneg %p1480_p10  ;;  %p1487_p1 = por %p1486_p0, %p1485_p9 }
  0x20   : > { %p1488_p2 = pnand %p1487_p1, %p1481_p12 }
  0x22   : > { %1491 = shalt.err (!%p1488_p2)
}
  0x23   : > { %s1529_s12 = smov 128   ;;  %s1530_s13 = smov 8  }
  0x24   : > { %1417 = dma.hbm_to_vmem [thread:$0]  (!%p1598_p8), %s1594_s21, 512, %s1596_s23, %s1603_s25, %s1529_s12, %s1529_s12, %s1530_s13  }
  0x25   : > { %p104_p11 = scmp.lt.s32.totalorder %s1526_s9, 5  ;;  %p2095_p13 = scmp.ge.s32.totalorder %s1526_s9, 1 }
  0x27   : > { %p105_p3 = pnand %p2095_p13, %p104_p11 }
  0x28   : > { %s110_s16 = sand.u32 (!%p105_p3), 1, %s1518_s7  }
  0x29   : > { %108 = sbr.rel (%p105_p3) target bundleno = 492 (0x1ec), region = 24  ;;  %s1401_s17 = sshll.u32 (!%p105_p3), %s110_s16, 5 }
  0x2a   : > { %s111_s18 = scalar_lea.sflag (!%p105_p3), [#allocation3], %s110_s16  ;;  %s114_s19 = scalar_lea.vmem (!%p105_p3), [#allocation2], %s1401_s17 }
  0x30   : > { %1509 = dma.done.wait (%p1585_p7), %s111_s18, 512  }
  0x31   : > { %1511 = vsyncadd (%p1585_p7), %s111_s18, 4294966784  ;;  %v158_v0 = vlaneseq  ;;  %v1531_v1 = vmov 1966171168   ;;  %vm144_vm0 = vcmask 130048   ;;  %v141_v6 = vld [vmem:[%s114_s19 + $0x8] sm:$0xff]  ;;  %v140_v7 = vld [vmem:[%s114_s19] sm:$0xff] }
  0x32   : > { %v156_v2 = vunpack.c.l.s4 %v1531_v1  ;;  %v142_v8 = vld [vmem:[%s114_s19 + $0x10] sm:$0xff]  ;;  %v1646_v9 = vsel %vm144_vm0, %v141_v6, -inf  ;;  %v145_v10 = vsel %vm144_vm0, %v140_v7, -inf  ;;  %v143_v16 = vld [vmem:[%s114_s19 + $0x18] sm:$0xff]  ;;  %vm653_vm1 = vcmask 141312   ;;  %s1533_s15 = smov 125  }
  0x33   : > { %v1640_v3 = vshrl.u32 %v158_v0, 7  ;;  %v147_v11 = vsel %vm144_vm0, %v142_v8, -inf  ;;  %v154_v14 = vcombine.high %v145_v10, %v145_v10  ;;  %v1659_v25 = vsel %vm144_vm0, %v143_v16, -inf  ;;  %s1534_s20 = smov 122   ;;  %s1535_s21 = smov 119  }
  0x34   : > { %v157_v4 = vunpack.c.0.s8 %v156_v2  ;;  %v274_v15 = vcombine.high %v147_v11, %v147_v11  ;;  %v203_v53 = vcombine.high %v1646_v9, %v1646_v9  ;;  %s1536_s22 = smov 113   ;;  %s1537_s23 = smov 116   ;;  %vm871_vm2 = vcmask 1041409  }
  0x35   : > { %vm874_vm3 = vcmask 1042434   ;;  %vm877_vm4 = vcmask 1043459   ;;  %vm880_vm5 = vcmask 1044484   ;;  %vm883_vm6 = vcmask 1045509   ;;  %s1402_s24 = sshll.u32 %s1392_s10, 1 }
  0x36   : > { %v1643_v5 = vsub.s32 %v157_v4, %v1640_v3  ;;  %vm1211_vm7 = vcmask 21504   ;;  %p135_p7 = scmp.lt.s32.totalorder %s1402_s24, 7  ;;  %vm1322_vm8 = vcmask 46080  }
  0x38   : > { %v210_v12 = vrot.slane %v1646_v9, %v1643_v5  ;;  %v161_v13 = vrot.slane %v145_v10, %v1643_v5  ;;  %v281_v17 = vrot.slane %v147_v11, %v1643_v5  ;;  %v168_v22 = vrot.slane %v154_v14, %v1643_v5  ;;  %s2101_s24 = smov (!%p135_p7, %s1402_s24), 7 }
  0x39   : > { %v288_v23 = vrot.slane %v274_v15, %v1643_v5  ;;  %v1676_v52 = vrot.slane %v1659_v25, %v1643_v5  ;;  %s1403_s25 = sshll.u32 %s2101_s24, 3 }
  0x3a   : > { %v218_v18 = vcombine.high %v210_v12, %v210_v12  ;;  %v226_v19 = vrot.slane %v210_v12, %v1643_v5  ;;  %v169_v20 = vcombine.high %v161_v13, %v161_v13  ;;  %v177_v21 = vrot.slane %v161_v13, %v1643_v5  ;;  %s138_s26 = scalar_lea.vmem %s2092_s1, %s1403_s25 }
  0x3b   : > { %v289_v24 = vcombine.high %v281_v17, %v281_v17  ;;  %v170_v30 = vcombine.high %v168_v22, %v168_v22  ;;  %v184_v31 = vrot.slane %v168_v22, %v1643_v5  ;;  %v290_v33 = vcombine.high %v288_v23, %v288_v23 }
  0x3c   : > { %v240_v26 = vrot.slane %v218_v18, %v1643_v5  ;;  %v248_v27 = vcombine.high %v226_v19, %v226_v19  ;;  %v191_v28 = vrot.slane %v169_v20, %v1643_v5  ;;  %v199_v29 = vcombine.high %v177_v21, %v177_v21 }
  0x3d   : > { %v432_v32 = vrot.slane %v226_v19, %v1643_v5  ;;  %v198_v38 = vrot.slane %v170_v30, %v1643_v5  ;;  %v304_v40 = vrot.slane %v288_v23, %v1643_v5  ;;  %v311_v41 = vrot.slane %v289_v24, %v1643_v5 }
  0x3e   : > { %v250_v34 = vcombine.high %v240_v26, %v240_v26  ;;  %v441_v35 = vcombine.low %v240_v26, %v248_v27  ;;  %v372_v36 = vcombine.low %v177_v21, %v191_v28  ;;  %v386_v37 = vrot.slane %v199_v29, %v1643_v5 }
  0x3f   : > { %v201_v39 = vcombine.high %v191_v28, %v191_v28  ;;  %v318_v45 = vrot.slane %v290_v33, %v1643_v5  ;;  %v409_v47 = vrot.slane %v198_v38, %v1643_v5  ;;  %v1404_v48 = vcombine.high %v184_v31, %v198_v38 }
  0x40   : > { %v448_v42 = vrot.slane %v441_v35, %v1643_v5  ;;  %v455_v43 = vrot.slane %v250_v34, %v1643_v5  ;;  %v379_v44 = vrot.slane %v372_v36, %v1643_v5  ;;  %v321_v49 = vcombine.high %v311_v41, %v311_v41 }
  0x41   : > { %v395_v46 = vcombine.low %v201_v39, %v184_v31  ;;  %v425_v55 = vrot.slane %v1404_v48, %v1643_v5  ;;  %v1405_v57 = vcombine.high %v304_v40, %v318_v45  ;;  %v547_v60 = vrot.slane %v318_v45, %v1643_v5 }
  0x42   : > { %v456_v50 = vcombine.low %v448_v42, %v455_v43  ;;  %v387_v51 = vcombine.low %v379_v44, %v386_v37  ;;  %v533_v56 = vcombine.low %v321_v49, %v304_v40  ;;  %v1687_v61 = vrot.slane %v1676_v52, %v1643_v5 }
  0x43   : > { %v402_v54 = vrot.slane %v395_v46, %v1643_v5  ;;  %v433_v63 = vcombine.low %v425_v55, %v432_v32  ;;  %v563_v2 = vrot.slane %v1405_v57, %v1643_v5  ;;  %v297_v8 = vrot.slane %v281_v17, %v1643_v5 }
  0x44   : > { %v463_v58 = vrot.slane %v456_v50, %v1643_v5  ;;  %v394_v59 = vrot.slane %v387_v51, %v1643_v5  ;;  %v540_v1 = vrot.slane %v533_v56, %v1643_v5  ;;  %v570_v7 = vrot.slane %v1687_v61, %v1643_v5 }
  0x45   : > { %v410_v62 = vcombine.low %v402_v54, %v409_v47  ;;  %v440_v12 = vrot.slane %v433_v63, %v1643_v5  ;;  %v319_v22 = vcombine.high %v297_v8, %v297_v8  ;;  %v217_v26 = vrot.slane %v203_v53, %v1643_v5 }
  0x46   : > { %v675_v4 = vsel %vm653_vm1, %v463_v58, -inf  ;;  %v654_v6 = vsel %vm653_vm1, %v394_v59, -inf  ;;  %v548_v13 = vcombine.low %v540_v1, %v547_v60  ;;  %v571_v14 = vcombine.low %v563_v2, %v570_v7 }
  0x47   : > { %v676_v9 = vrot.slane %v675_v4, 4  ;;  %v655_v10 = vrot.slane %v654_v6, 4  ;;  %v417_v11 = vrot.slane %v410_v62, %v1643_v5  ;;  %v668_v19 = vsel %vm653_vm1, %v440_v12, -inf }
  0x48   : > { %v555_v21 = vrot.slane %v548_v13, %v1643_v5  ;;  %v669_v24 = vrot.slane %v668_v19, 4  ;;  %v578_v29 = vrot.slane %v571_v14, %v1643_v5  ;;  %v510_v30 = vcombine.low %v297_v8, %v311_v41 }
  0x49   : > { %v677_v15 = vmax.f32 %v675_v4, %v676_v9  ;;  %v656_v16 = vmax.f32 %v654_v6, %v655_v10  ;;  %v661_v18 = vsel %vm653_vm1, %v417_v11, -inf  ;;  %v219_v35 = vcombine.high %v217_v26, %v217_v26 }
  0x4a   : > { %v662_v20 = vrot.slane %v661_v18, 4  ;;  %v703_v28 = vsel %vm653_vm1, %v555_v21, -inf  ;;  %v670_v38 = vmax.f32 %v668_v19, %v669_v24  ;;  %v1532_v39 = vmov -inf  }
  0x4b   : > { %v678_v23 = vrot.slane %v677_v15, 2  ;;  %v657_v17 = vrot.slane %v656_v16, 2  ;;  %v704_v33 = vrot.slane %v703_v28, 4  ;;  %v258_v40 = vrot.slane %v1532_v39, %v1643_v5 }
  0x4c   : > { %v663_v27 = vmax.f32 %v661_v18, %v662_v20  ;;  %v710_v42 = vsel %vm653_vm1, %v578_v29, -inf  ;;  %v517_v43 = vrot.slane %v510_v30, %v1643_v5  ;;  %v524_v44 = vrot.slane %v319_v22, %v1643_v5 }
  0x4d   : > { %v679_v31 = vmax.f32 %v677_v15, %v678_v23  ;;  %v658_v32 = vmax.f32 %v656_v16, %v657_v17  ;;  %v233_v45 = vrot.slane %v217_v26, %v1643_v5  ;;  %v705_v48 = vmax.f32 %v703_v28, %v704_v33 }
  0x4e   : > { %v664_v34 = vrot.slane %v663_v27, 2  ;;  %v247_v49 = vrot.slane %v219_v35, %v1643_v5  ;;  %v671_v50 = vrot.slane %v670_v38, 2  ;;  %v711_v51 = vrot.slane %v710_v42, 4 }
  0x4f   : > { %v680_v36 = vrot.slane %v679_v31, 1  ;;  %v659_v37 = vrot.slane %v658_v32, 1  ;;  %v249_v53 = vcombine.high %v233_v45, %v233_v45  ;;  %v323_v54 = vcombine.high %v1659_v25, %v1659_v25 }
  0x50   : > { %v665_v47 = vmax.f32 %v663_v27, %v664_v34  ;;  %v464_v55 = vcombine.low %v233_v45, %v247_v49  ;;  %v338_v56 = vcombine.high %v1676_v52, %v1676_v52  ;;  %v259_v57 = vcombine.high %v258_v40, %v258_v40 }
  0x51   : > { %v1709_v41 = vmax.f32 %v679_v31, %v680_v36  ;;  %v1711_v46 = vmax.f32 %v658_v32, %v659_v37  ;;  %v706_v59 = vrot.slane %v705_v48, 2  ;;  %v525_v60 = vcombine.low %v517_v43, %v524_v44 }
  0x52   : > { %v666_v58 = vrot.slane %v665_v47, 1  ;;  %v478_v62 = vrot.slane %v249_v53, %v1643_v5  ;;  %v471_v63 = vrot.slane %v464_v55, %v1643_v5  ;;  %v360_v1 = vrot.slane %v338_v56, %v1643_v5 }
  0x53   : > { %756 = vrot.lane.b32.xlu0 %v1709_v41, %s1533_s15  ;;  %750 = vrot.lane.b32.xlu1 %v1711_v46, %s1533_s15  ;;  %v368_v2 = vcombine.high %v1687_v61, %v1687_v61  ;;  %v251_v4 = vcombine.high %v247_v49, %v247_v49  ;;  %v672_v25 = vmax.f32 %v670_v38, %v671_v50 }
  0x54   : > { %v712_v52 = vmax.f32 %v710_v42, %v711_v51  ;;  %v266_v6 = vrot.slane %v258_v40, %v1643_v5  ;;  %v479_v7 = vcombine.low %v471_v63, %v478_v62  ;;  %v370_v8 = vcombine.high %v360_v1, %v360_v1 }
  0x55   : > { %v579_v9 = vcombine.low %v360_v1, %v368_v2  ;;  %v273_v10 = vrot.slane %v259_v57, %v1643_v5  ;;  %v707_v11 = vmax.f32 %v705_v48, %v706_v59  ;;  %v532_v61 = vrot.slane %v525_v60, %v1643_v5 }
  0x56   : > { %v487_v12 = vcombine.low %v251_v4, %v266_v6  ;;  %v337_v13 = vrot.slane %v323_v54, %v1643_v5  ;;  %v1735_v14 = vmax.f32 %v665_v47, %v666_v58  ;;  %v593_v16 = vrot.slane %v370_v8, %v1643_v5 }
  0x57   : > { %774 = vrot.lane.b32.xlu0 %v1711_v46, %s1534_s20  ;;  %780 = vrot.lane.b32.xlu1 %v1709_v41, %s1534_s20  ;;  %v586_v15 = vrot.slane %v579_v9, %v1643_v5  ;;  %v501_v18 = vrot.slane %v273_v10, %v1643_v5  ;;  %v673_v19 = vrot.slane %v672_v25, 1  ;;  %v486_v23 = vrot.slane %v479_v7, %v1643_v5 }
  0x58   : > { %v494_v20 = vrot.slane %v487_v12, %v1643_v5  ;;  %v339_v21 = vcombine.high %v337_v13, %v337_v13  ;;  %v353_v22 = vrot.slane %v337_v13, %v1643_v5  ;;  %v713_v27 = vrot.slane %v712_v52, 2 }
  0x59   : > { %v594_v17 = vcombine.low %v586_v15, %v593_v16  ;;  %v696_v28 = vsel %vm653_vm1, %v532_v61, -inf  ;;  %v1753_v30 = vmax.f32 %v672_v25, %v673_v19  ;;  %v708_v31 = vrot.slane %v707_v11, 1 }
  0x5a   : > { %v502_v24 = vcombine.low %v494_v20, %v501_v18  ;;  %v367_v26 = vrot.slane %v339_v21, %v1643_v5  ;;  %v369_v29 = vcombine.high %v353_v22, %v353_v22  ;;  %v682_v34 = vsel %vm653_vm1, %v486_v23, -inf }
  0x5b   : > { %804 = vrot.lane.b32.xlu0 %v1709_v41, %s1535_s21  ;;  %798 = vrot.lane.b32.xlu1 %v1711_v46, %s1535_s21  ;;  %v601_v35 = vrot.slane %v594_v17, %v1643_v5  ;;  %v714_v40 = vmax.f32 %v712_v52, %v713_v27  ;;  %v1765_v43 = vmax.f32 %v707_v11, %v708_v31  ;;  %v697_v44 = vrot.slane %v696_v28, 4 }
  0x5c   : > { %v509_v32 = vrot.slane %v502_v24, %v1643_v5  ;;  %v602_v33 = vcombine.low %v353_v22, %v367_v26  ;;  %v616_v36 = vrot.slane %v369_v29, %v1643_v5  ;;  %v371_v37 = vcombine.high %v367_v26, %v367_v26 }
  0x5d   : > { %v683_v45 = vrot.slane %v682_v34, 4  ;;  %v717_v48 = vsel %vm653_vm1, %v601_v35, -inf  ;;  %v715_v51 = vrot.slane %v714_v40, 1  ;;  %v698_v54 = vmax.f32 %v696_v28, %v697_v44 }
  0x5e   : > { %v689_v38 = vsel %vm653_vm1, %v509_v32, -inf  ;;  %v609_v39 = vrot.slane %v602_v33, %v1643_v5  ;;  %v625_v42 = vcombine.low %v371_v37, %v266_v6  ;;  %v718_v56 = vrot.slane %v717_v48, 4 }
  0x5f   : > { %800 = vrot.lane.b32.xlu1 %v1735_v14, %s1535_s21  ;;  %752 = vrot.lane.b32.xlu0 %v1735_v14, %s1533_s15  ;;  %v684_v55 = vmax.f32 %v682_v34, %v683_v45  ;;  %v1783_v60 = vmax.f32 %v714_v40, %v715_v51  ;;  %v699_v62 = vrot.slane %v698_v54, 2  ;;  %v690_v7 = vrot.slane %v689_v38, 4 }
  0x60   : > { %v617_v47 = vcombine.low %v609_v39, %v616_v36  ;;  %v632_v49 = vrot.slane %v625_v42, %v1643_v5  ;;  %v719_v1 = vmax.f32 %v717_v48, %v718_v56  ;;  %v870_v19 = vrot.slane %v1735_v14, 7 }
  0x61   : > { %v685_v63 = vrot.slane %v684_v55, 2  ;;  %v691_v11 = vmax.f32 %v689_v38, %v690_v7  ;;  %v873_v22 = vrot.slane %v1753_v30, 6  ;;  %v876_v23 = vrot.slane %v1709_v41, 5 }
  0x62   : > { %v624_v50 = vrot.slane %v617_v47, %v1643_v5  ;;  %v633_v53 = vcombine.low %v632_v49, %v501_v18  ;;  %v720_v4 = vrot.slane %v719_v1, 2  ;;  %v935_v38 = vrot.slane %v1765_v43, 7 }
  0x63   : > { %754 = vrot.lane.b32.xlu1 %v1753_v30, %s1533_s15  ;;  %776 = vrot.lane.b32.xlu0 %v1735_v14, %s1534_s20  ;;  %v686_v2 = vmax.f32 %v684_v55, %v685_v63  ;;  %v692_v12 = vrot.slane %v691_v11, 2  ;;  %v937_v39 = vrot.slane %v1783_v60, 6 }
  0x64   : > { %v724_v57 = vsel %vm653_vm1, %v624_v50, -inf  ;;  %v640_v58 = vrot.slane %v633_v53, %v1643_v5  ;;  %v700_v5 = vmax.f32 %v698_v54, %v699_v62  ;;  %v721_v6 = vmax.f32 %v719_v1, %v720_v4 }
  0x65   : > { %v687_v52 = vrot.slane %v686_v2, 1  ;;  %v693_v13 = vmax.f32 %v691_v11, %v692_v12  ;;  %v725_v15 = vrot.slane %v724_v57, 4 }
  0x66   : > { %v1777_v59 = vsel %vm653_vm1, %v640_v58, -inf  ;;  %v701_v25 = vrot.slane %v700_v5, 1  ;;  %v722_v10 = vrot.slane %v721_v6, 1 }
  0x67   : > { %778 = vrot.lane.b32.xlu1 %v1753_v30, %s1534_s20  ;;  %764 = vrot.lane.b32.xlu0 %v1765_v43, %s1533_s15  ;;  %v1799_v9 = vmax.f32 %v686_v2, %v687_v52  ;;  %v694_v16 = vrot.slane %v693_v13, 1  ;;  %v726_v18 = vmax.f32 %v724_v57, %v725_v15  ;;  %v732_v29 = vrot.slane %v1777_v59, 4 }
  0x68   : > { %v1797_v8 = vmax.f32 %v700_v5, %v701_v25  ;;  %v1805_v61 = vmax.f32 %v721_v6, %v722_v10 }
  0x69   : > { %v1820_v20 = vmax.f32 %v693_v13, %v694_v16  ;;  %v727_v21 = vrot.slane %v726_v18, 2  ;;  %v879_v17 = vrot.slane %v1799_v9, 4  ;;  %v733_v34 = vmax.f32 %v1777_v59, %v732_v29 }
  0x6a   : > { %v936_v42 = vsel %vm871_vm2, %v935_v38, %v1797_v8  ;;  %v939_v44 = vrot.slane %v1805_v61, 5 }
  0x6b   : > { %802 = vrot.lane.b32.xlu1 %v1753_v30, %s1535_s21  ;;  %788 = vrot.lane.b32.xlu0 %v1765_v43, %s1534_s20  ;;  %v882_v24 = vrot.slane %v1820_v20, 3  ;;  %v728_v27 = vmax.f32 %v726_v18, %v727_v21  ;;  %v734_v36 = vrot.slane %v733_v34, 2  ;;  %v938_v45 = vsel %vm874_vm3, %v937_v39, %v936_v42 }
  0x6c   : > { %v940_v48 = vsel %vm877_vm4, %v939_v44, %v938_v45 }
  0x6d   : > { %v729_v33 = vrot.slane %v728_v27, 1 }
  0x6f   : > { %766 = vrot.lane.b32.xlu1 %v1783_v60, %s1533_s15  ;;  %812 = vrot.lane.b32.xlu0 %v1765_v43, %s1535_s21  ;;  %v730_v35 = vmax.f32 %v728_v27, %v729_v33 }
  0x71   : > { %v941_v47 = vrot.slane %v730_v35, 4 }
  0x73   : > { %814 = vrot.lane.b32.xlu1 %v1783_v60, %s1535_s21  ;;  %790 = vrot.lane.b32.xlu0 %v1783_v60, %s1534_s20 }
  0x77   : > { %848 = vrot.lane.b32.xlu1 %v1735_v14, %s1536_s22  ;;  %824 = vrot.lane.b32.xlu0 %v1735_v14, %s1537_s23  ;;  %v872_v14 = vsel %vm871_vm2, %v870_v19, %v1711_v46 }
  0x78   : > { %v875_v26 = vsel %vm874_vm3, %v873_v22, %v872_v14 }
  0x79   : > { %v878_v28 = vsel %vm877_vm4, %v876_v23, %v875_v26 }
  0x7a   : > { %v881_v31 = vsel %vm880_vm5, %v879_v17, %v878_v28 }
  0x7b   : > { %762 = vrot.lane.b32.xlu1 %v1797_v8, %s1533_s15  ;;  %758 = vrot.lane.b32.xlu0 %v1799_v9, %s1533_s15  ;;  %v1837_v32 = vsel %vm883_vm6, %v882_v24, %v881_v31 }
  0x7f   : > { %782 = vrot.lane.b32.xlu1 %v1799_v9, %s1534_s20  ;;  %768 = vrot.lane.b32.xlu0 %v1805_v61, %s1533_s15 }
  0x83   : > { %792 = vrot.lane.b32.xlu1 %v1805_v61, %s1534_s20  ;;  %786 = vrot.lane.b32.xlu0 %v1797_v8, %s1534_s20 }
  0x87   : > { %810 = vrot.lane.b32.xlu1 %v1797_v8, %s1535_s21  ;;  %806 = vrot.lane.b32.xlu0 %v1799_v9, %s1535_s21 }
  0x8b   : > { %826 = vrot.lane.b32.xlu1 %v1753_v30, %s1537_s23  ;;  %816 = vrot.lane.b32.xlu0 %v1805_v61, %s1535_s21 }
  0x8f   : > { %850 = vrot.lane.b32.xlu1 %v1753_v30, %s1536_s22  ;;  %836 = vrot.lane.b32.xlu0 %v1765_v43, %s1537_s23  ;;  %v735_v30 = vmax.f32 %v733_v34, %v734_v36 }
  0x91   : > { %v736_v37 = vrot.slane %v735_v30, 1 }
  0x93   : > { %760 = vrot.lane.b32.xlu1 %v1820_v20, %s1533_s15  ;;  %860 = vrot.lane.b32.xlu0 %v1765_v43, %s1536_s22  ;;  %v737_v40 = vmax.f32 %v735_v30, %v736_v37  ;;  %v942_v43 = vsel %vm880_vm5, %v941_v47, %v940_v48 }
  0x95   : > { %v943_v49 = vrot.slane %v737_v40, 3 }
  0x97   : > { %784 = vrot.lane.b32.xlu1 %v1820_v20, %s1534_s20  ;;  %770 = vrot.lane.b32.xlu0 %v730_v35, %s1533_s15  ;;  %v1870_v50 = vsel %vm883_vm6, %v943_v49, %v942_v43 }
  0x9b   : > { %808 = vrot.lane.b32.xlu1 %v1820_v20, %s1535_s21  ;;  %794 = vrot.lane.b32.xlu0 %v730_v35, %s1534_s20 }
  0x9f   : > { %822 = vrot.lane.b32.xlu1 %v1711_v46, %s1537_s23  ;;  %818 = vrot.lane.b32.xlu0 %v730_v35, %s1535_s21 }
  0xa3   : > { %838 = vrot.lane.b32.xlu1 %v1783_v60, %s1537_s23  ;;  %828 = vrot.lane.b32.xlu0 %v1709_v41, %s1537_s23 }
  0xa7   : > { %852 = vrot.lane.b32.xlu1 %v1709_v41, %s1536_s22  ;;  %846 = vrot.lane.b32.xlu0 %v1711_v46, %s1536_s22 }
  0xab   : > { %772 = vrot.lane.b32.xlu1 %v737_v40, %s1533_s15  ;;  %862 = vrot.lane.b32.xlu0 %v1783_v60, %s1536_s22 }
  0xaf   : > { %820 = vrot.lane.b32.xlu1 %v737_v40, %s1535_s21  ;;  %796 = vrot.lane.b32.xlu0 %v737_v40, %s1534_s20 }
  0xb3   : > { %834 = vrot.lane.b32.xlu1 %v1797_v8, %s1537_s23  ;;  %830 = vrot.lane.b32.xlu0 %v1799_v9, %s1537_s23 }
  0xb7   : > { %854 = vrot.lane.b32.xlu1 %v1799_v9, %s1536_s22  ;;  %840 = vrot.lane.b32.xlu0 %v1805_v61, %s1537_s23 }
  0xbb   : > { %864 = vrot.lane.b32.xlu1 %v1805_v61, %s1536_s22  ;;  %858 = vrot.lane.b32.xlu0 %v1797_v8, %s1536_s22 }
  0xbf   : > { %842 = vrot.lane.b32.xlu1 %v730_v35, %s1537_s23  ;;  %832 = vrot.lane.b32.xlu0 %v1820_v20, %s1537_s23 }
  0xc3   : > { %866 = vrot.lane.b32.xlu1 %v730_v35, %s1536_s22  ;;  %856 = vrot.lane.b32.xlu0 %v1820_v20, %s1536_s22 }
  0xc5   : > { %v757_v41 = vpop.permute.xlu0 %756  ;;  %v751_v46 = vpop.permute.xlu1 %750 }
  0xc6   : > { %v889_v4 = vrot.slane %v757_v41, 5 }
  0xc7   : > { %868 = vrot.lane.b32.xlu1 %v737_v40, %s1536_s22  ;;  %844 = vrot.lane.b32.xlu0 %v737_v40, %s1537_s23 }
  0xc9   : > { %v775_v51 = vpop.permute.xlu0 %774  ;;  %v781_v53 = vpop.permute.xlu1 %780 }
  0xca   : > { %v899_v10 = vrot.slane %v781_v53, 5 }
  0xcd   : > { %v805_v54 = vpop.permute.xlu0 %804  ;;  %v799_v55 = vpop.permute.xlu1 %798 }
  0xce   : > { %v909_v16 = vrot.slane %v805_v54, 5 }
  0xd1   : > { %v801_v56 = vpop.permute.xlu1 %800  ;;  %v753_v57 = vpop.permute.xlu0 %752 }
  0xd2   : > { %v905_v58 = vrot.slane %v801_v56, 7  ;;  %v885_v59 = vrot.slane %v753_v57, 7 }
  0xd4   : > { %v906_v60 = vsel %vm871_vm2, %v905_v58, %v799_v55  ;;  %v886_v62 = vsel %vm871_vm2, %v885_v59, %v751_v46 }
  0xd5   : > { %v755_v63 = vpop.permute.xlu1 %754  ;;  %v777_v1 = vpop.permute.xlu0 %776 }
  0xd6   : > { %v887_v5 = vrot.slane %v755_v63, 6  ;;  %v895_v2 = vrot.slane %v777_v1, 7  ;;  %v1538_v63 = vmov 1983009808  }
  0xd7   : > { %v1010_v1 = vunpack.c.l.s4 %v1538_v63 }
  0xd8   : > { %v888_v25 = vsel %vm874_vm3, %v887_v5, %v886_v62  ;;  %v896_v52 = vsel %vm871_vm2, %v895_v2, %v775_v51 }
  0xd9   : > { %v779_v6 = vpop.permute.xlu1 %778  ;;  %v765_v7 = vpop.permute.xlu0 %764  ;;  %v890_v8 = vsel %vm877_vm4, %v889_v4, %v888_v25 }
  0xda   : > { %v897_v9 = vrot.slane %v779_v6, 6  ;;  %v945_v14 = vrot.slane %v765_v7, 7 }
  0xdc   : > { %v898_v11 = vsel %vm874_vm3, %v897_v9, %v896_v52  ;;  %v1011_v52 = vunpack.c.0.s8 %v1010_v1 }
  0xdd   : > { %v803_v61 = vpop.permute.xlu1 %802  ;;  %v789_v12 = vpop.permute.xlu0 %788  ;;  %v900_v13 = vsel %vm877_vm4, %v899_v10, %v898_v11 }
  0xde   : > { %v907_v15 = vrot.slane %v803_v61, 6  ;;  %v955_v38 = vrot.slane %v789_v12, 7 }
  0xe0   : > { %v908_v18 = vsel %vm874_vm3, %v907_v15, %v906_v60 }
  0xe1   : > { %v767_v19 = vpop.permute.xlu1 %766  ;;  %v813_v20 = vpop.permute.xlu0 %812  ;;  %v910_v21 = vsel %vm877_vm4, %v909_v16, %v908_v18 }
  0xe2   : > { %v947_v26 = vrot.slane %v767_v19, 6  ;;  %v965_v43 = vrot.slane %v813_v20, 7 }
  0xe5   : > { %v815_v22 = vpop.permute.xlu1 %814  ;;  %v791_v23 = vpop.permute.xlu0 %790 }
  0xe6   : > { %v957_v42 = vrot.slane %v791_v23, 6  ;;  %v967_v46 = vrot.slane %v815_v22, 6 }
  0xe9   : > { %v1910_v17 = vpop.permute.xlu1 %848  ;;  %v1912_v24 = vpop.permute.xlu0 %824 }
  0xed   : > { %v763_v27 = vpop.permute.xlu1 %762  ;;  %v759_v28 = vpop.permute.xlu0 %758 }
  0xee   : > { %v946_v29 = vsel %vm871_vm2, %v945_v14, %v763_v27  ;;  %v891_v31 = vrot.slane %v759_v28, 4 }
  0xef   : > { %v948_v33 = vsel %vm874_vm3, %v947_v26, %v946_v29 }
  0xf0   : > { %v892_v34 = vsel %vm880_vm5, %v891_v31, %v890_v8 }
  0xf1   : > { %v783_v35 = vpop.permute.xlu1 %782  ;;  %v769_v36 = vpop.permute.xlu0 %768 }
  0xf2   : > { %v901_v30 = vrot.slane %v783_v35, 4  ;;  %v949_v37 = vrot.slane %v769_v36, 5 }
  0xf4   : > { %v902_v39 = vsel %vm880_vm5, %v901_v30, %v900_v13  ;;  %v1919_v40 = vsel %vm877_vm4, %v949_v37, %v948_v33  ;;  %v1939_v13 = vsub.s32 %v1011_v52, %v1640_v3 }
  0xf5   : > { %v793_v44 = vpop.permute.xlu1 %792  ;;  %v787_v45 = vpop.permute.xlu0 %786 }
  0xf6   : > { %v959_v47 = vrot.slane %v793_v44, 5  ;;  %v956_v48 = vsel %vm871_vm2, %v955_v38, %v787_v45 }
  0xf7   : > { %v958_v49 = vsel %vm874_vm3, %v957_v42, %v956_v48 }
  0xf8   : > { %v960_v41 = vsel %vm877_vm4, %v959_v47, %v958_v49 }
  0xf9   : > { %v811_v51 = vpop.permute.xlu1 %810  ;;  %v807_v53 = vpop.permute.xlu0 %806 }
  0xfa   : > { %v966_v54 = vsel %vm871_vm2, %v965_v43, %v811_v51  ;;  %v911_v25 = vrot.slane %v807_v53, 4 }
  0xfb   : > { %v968_v55 = vsel %vm874_vm3, %v967_v46, %v966_v54 }
  0xfc   : > { %v912_v12 = vsel %vm880_vm5, %v911_v25, %v910_v21 }
  0xfd   : > { %v1926_v56 = vpop.permute.xlu1 %826  ;;  %v817_v57 = vpop.permute.xlu0 %816 }
  0xfe   : > { %v969_v30 = vrot.slane %v817_v57, 5 }
 0x100   : > { %v970_v47 = vsel %vm877_vm4, %v969_v30, %v968_v55  ;;  %v917_v30 = vrot.slane %v1926_v56, 6 }
 0x101   : > { %v1928_v58 = vpop.permute.xlu1 %850  ;;  %v1930_v59 = vpop.permute.xlu0 %836 }
 0x105   : > { %v761_v60 = vpop.permute.xlu1 %760  ;;  %v1932_v62 = vpop.permute.xlu0 %860 }
 0x106   : > { %v893_v6 = vrot.slane %v761_v60, 3 }
 0x108   : > { %v894_v15 = vsel %vm883_vm6, %v893_v6, %v892_v34 }
 0x109   : > { %v785_v5 = vpop.permute.xlu1 %784  ;;  %v771_v2 = vpop.permute.xlu0 %770 }
 0x10a   : > { %v903_v4 = vrot.slane %v785_v5, 3  ;;  %v951_v37 = vrot.slane %v771_v2, 4 }
 0x10c   : > { %v904_v7 = vsel %vm883_vm6, %v903_v4, %v902_v39  ;;  %v952_v43 = vsel %vm880_vm5, %v951_v37, %v1919_v40 }
 0x10d   : > { %v1007_v8 = vcombine.low %v1837_v32, %v904_v7  ;;  %v1008_v9 = vcombine.high %v1837_v32, %v904_v7  ;;  %v809_v10 = vpop.permute.xlu1 %808  ;;  %v795_v11 = vpop.permute.xlu0 %794 }
 0x10e   : > { %v913_v61 = vrot.slane %v809_v10, 3  ;;  %v961_v38 = vrot.slane %v795_v11, 4 }
 0x10f   : > { %v1944_v23 = vrot.slane %v1007_v8, %v1939_v13  ;;  %v1947_v32 = vrot.slane %v1008_v9, %v1939_v13  ;;  %v925_v9 = vrot.slane %v1910_v17, 7 }
 0x110   : > { %v914_v16 = vsel %vm883_vm6, %v913_v61, %v912_v12  ;;  %v962_v46 = vsel %vm880_vm5, %v961_v38, %v960_v41  ;;  %v915_v61 = vrot.slane %v1912_v24, 7  ;;  %v985_v24 = vrot.slane %v1932_v62, 7 }
 0x111   : > { %v1023_v18 = vcombine.low %v894_v15, %v914_v16  ;;  %v1024_v19 = vcombine.high %v894_v15, %v914_v16  ;;  %v823_v20 = vpop.permute.xlu1 %822  ;;  %v819_v22 = vpop.permute.xlu0 %818  ;;  %v927_v15 = vrot.slane %v1928_v58, 6  ;;  %v1539_v16 = vmov 1934713408  }
 0x112   : > { %v971_v39 = vrot.slane %v819_v22, 4 }
 0x113   : > { %v1950_v14 = vrot.slane %v1023_v18, %v1939_v13  ;;  %v1953_v21 = vrot.slane %v1024_v19, %v1939_v13  ;;  %v1058_v18 = vunpack.c.l.s4 %v1539_v16  ;;  %v916_v19 = vsel %vm871_vm2, %v915_v61, %v823_v20 }
 0x114   : > { %v972_v51 = vsel %vm880_vm5, %v971_v39, %v970_v47  ;;  %v918_v58 = vsel %vm874_vm3, %v917_v30, %v916_v19 }
 0x115   : > { %v1955_v26 = vpop.permute.xlu1 %838  ;;  %v1957_v27 = vpop.permute.xlu0 %828  ;;  %v1055_v28 = vcombine.low %v1944_v23, %v1950_v14  ;;  %v1056_v29 = vcombine.high %v1944_v23, %v1950_v14  ;;  %v1071_v31 = vcombine.low %v1947_v32, %v1953_v21 }
 0x116   : > { %v919_v22 = vrot.slane %v1957_v27, 5  ;;  %v977_v20 = vrot.slane %v1955_v26, 6 }
 0x118   : > { %v920_v27 = vsel %vm877_vm4, %v919_v22, %v918_v58 }
 0x119   : > { %v853_v33 = vpop.permute.xlu1 %852  ;;  %v847_v34 = vpop.permute.xlu0 %846 }
 0x11a   : > { %v926_v12 = vsel %vm871_vm2, %v925_v9, %v847_v34  ;;  %v975_v34 = vrot.slane %v1930_v59, 7 }
 0x11b   : > { %v928_v37 = vsel %vm874_vm3, %v927_v15, %v926_v12 }
 0x11d   : > { %v773_v35 = vpop.permute.xlu1 %772  ;;  %v1965_v36 = vpop.permute.xlu0 %862 }
 0x11e   : > { %v953_v42 = vrot.slane %v773_v35, 3  ;;  %v929_v35 = vrot.slane %v853_v33, 5  ;;  %v987_v47 = vrot.slane %v1965_v36, 6 }
 0x120   : > { %v954_v53 = vsel %vm883_vm6, %v953_v42, %v952_v43  ;;  %v930_v56 = vsel %vm877_vm4, %v929_v35, %v928_v37 }
 0x121   : > { %v821_v44 = vpop.permute.xlu1 %820  ;;  %v797_v45 = vpop.permute.xlu0 %796 }
 0x122   : > { %v973_v48 = vrot.slane %v821_v44, 3  ;;  %v963_v49 = vrot.slane %v797_v45, 3  ;;  %v1059_v45 = vunpack.c.0.s8 %v1058_v18 }
 0x124   : > { %v974_v54 = vsel %vm883_vm6, %v973_v48, %v972_v51  ;;  %v964_v57 = vsel %vm883_vm6, %v963_v49, %v962_v46 }
 0x125   : > { %v1125_v60 = vcombine.low %v954_v53, %v974_v54  ;;  %v1126_v63 = vcombine.high %v954_v53, %v974_v54  ;;  %v1109_v1 = vcombine.low %v1870_v50, %v964_v57  ;;  %v1110_v55 = vcombine.high %v1870_v50, %v964_v57  ;;  %v835_v5 = vpop.permute.xlu1 %834  ;;  %v831_v2 = vpop.permute.xlu0 %830 }
 0x126   : > { %v921_v17 = vrot.slane %v831_v2, 4  ;;  %v976_v48 = vsel %vm871_vm2, %v975_v34, %v835_v5 }
 0x127   : > { %v1978_v40 = vrot.slane %v1125_v60, %v1939_v13  ;;  %v1981_v41 = vrot.slane %v1126_v63, %v1939_v13  ;;  %v1984_v4 = vrot.slane %v1109_v1, %v1939_v13  ;;  %v1987_v25 = vrot.slane %v1110_v55, %v1939_v13 }
 0x128   : > { %v922_v62 = vsel %vm880_vm5, %v921_v17, %v920_v27  ;;  %v978_v63 = vsel %vm874_vm3, %v977_v20, %v976_v48  ;;  %v1062_v1 = vsub.s32 %v1059_v45, %v1640_v3 }
 0x129   : > { %v855_v52 = vpop.permute.xlu1 %854  ;;  %v841_v6 = vpop.permute.xlu0 %840  ;;  %v1157_v7 = vcombine.low %v1984_v4, %v1978_v40  ;;  %v1158_v50 = vcombine.high %v1984_v4, %v1978_v40  ;;  %v1173_v8 = vcombine.low %v1987_v25, %v1981_v41 }
 0x12a   : > { %v931_v44 = vrot.slane %v855_v52, 4  ;;  %v979_v49 = vrot.slane %v841_v6, 5  ;;  %v1078_v30 = vrot.slane %v1071_v31, %v1062_v1 }
 0x12b   : > { %v1180_v40 = vrot.slane %v1173_v8, %v1062_v1 }
 0x12c   : > { %v932_v54 = vsel %vm880_vm5, %v931_v44, %v930_v56  ;;  %v980_v55 = vsel %vm877_vm4, %v979_v49, %v978_v63  ;;  %v1172_v56 = vrot.slane %v1158_v50, %v1062_v1 }
 0x12d   : > { %v865_v10 = vpop.permute.xlu1 %864  ;;  %v859_v11 = vpop.permute.xlu0 %858 }
 0x12e   : > { %v986_v33 = vsel %vm871_vm2, %v985_v24, %v859_v11  ;;  %v989_v46 = vrot.slane %v865_v10, 5  ;;  %v1070_v24 = vrot.slane %v1056_v29, %v1062_v1 }
 0x12f   : > { %v988_v57 = vsel %vm874_vm3, %v987_v47, %v986_v33 }
 0x130   : > { %v990_v10 = vsel %vm877_vm4, %v989_v46, %v988_v57 }
 0x131   : > { %v843_v38 = vpop.permute.xlu1 %842  ;;  %v833_v39 = vpop.permute.xlu0 %832 }
 0x132   : > { %v923_v42 = vrot.slane %v833_v39, 3  ;;  %v981_v51 = vrot.slane %v843_v38, 4  ;;  %v1063_v38 = vrot.slane %v1055_v28, %v1062_v1 }
 0x134   : > { %v924_v53 = vsel %vm883_vm6, %v923_v42, %v922_v62  ;;  %v982_v11 = vsel %vm880_vm5, %v981_v51, %v980_v55 }
 0x135   : > { %v867_v59 = vpop.permute.xlu1 %866  ;;  %v857_v43 = vpop.permute.xlu0 %856  ;;  %v1045_v5 = vrot.slane %v924_v53, %v1939_v13 }
 0x136   : > { %v933_v26 = vrot.slane %v857_v43, 3  ;;  %v991_v60 = vrot.slane %v867_v59, 4 }
 0x138   : > { %v934_v36 = vsel %vm883_vm6, %v933_v26, %v932_v54  ;;  %v992_v15 = vsel %vm880_vm5, %v991_v60, %v990_v10 }
 0x139   : > { %v1053_v2 = vrot.slane %v934_v36, %v1939_v13  ;;  %v1406_v52 = vcombine.high %v924_v53, %v934_v36  ;;  %v869_v6 = vpop.permute.xlu1 %868  ;;  %v845_v9 = vpop.permute.xlu0 %844  ;;  %v1261_v36 = vand.u32 127, %v158_v0 }
 0x13a   : > { %v993_v61 = vrot.slane %v869_v6, 3  ;;  %v983_v12 = vrot.slane %v845_v9, 3 }
 0x13b   : > { %v1079_v16 = vcombine.low %v1045_v5, %v1053_v2  ;;  %v1080_v18 = vcombine.high %v1045_v5, %v1053_v2  ;;  %v1102_v19 = vrot.slane %v1406_v52, %v1062_v1  ;;  %v1264_v5 = vsub.s32 %v1261_v36, %v1640_v3 }
 0x13c   : > { %v994_v22 = vsel %vm883_vm6, %v993_v61, %v992_v15  ;;  %v984_v35 = vsel %vm883_vm6, %v983_v12, %v982_v11 }
 0x13d   : > { %v1155_v37 = vrot.slane %v994_v22, %v1939_v13  ;;  %v1147_v17 = vrot.slane %v984_v35, %v1939_v13  ;;  %v1087_v39 = vrot.slane %v1079_v16, %v1062_v1  ;;  %v1094_v42 = vrot.slane %v1080_v18, %v1062_v1 }
 0x13e   : > { %v1107_v34 = vcombine.low %v1078_v30, %v1102_v19  ;;  %v1108_v58 = vcombine.high %v1078_v30, %v1102_v19  ;;  %v1165_v13 = vrot.slane %v1157_v7, %v1062_v1  ;;  %v1407_v33 = vcombine.high %v984_v35, %v994_v22 }
 0x13f   : > { %v1104_v44 = vcombine.high %v1063_v38, %v1087_v39  ;;  %v1103_v45 = vcombine.low %v1063_v38, %v1087_v39  ;;  %v1181_v32 = vcombine.low %v1147_v17, %v1155_v37  ;;  %v1182_v21 = vcombine.high %v1147_v17, %v1155_v37 }
 0x140   : > { %v1105_v31 = vcombine.low %v1070_v24, %v1094_v42  ;;  %v1106_v20 = vcombine.high %v1070_v24, %v1094_v42  ;;  %v1204_v46 = vrot.slane %v1407_v33, %v1062_v1  ;;  %v1224_v26 = vsel %vm1211_vm7, %v1107_v34, -inf }
 0x141   : > { %v1215_v28 = vsel %vm1211_vm7, %v1104_v44, -inf  ;;  %v1212_v27 = vsel %vm1211_vm7, %v1103_v45, -inf  ;;  %v1189_v23 = vrot.slane %v1181_v32, %v1062_v1  ;;  %v1196_v14 = vrot.slane %v1182_v21, %v1062_v1 }
 0x142   : > { %1216 = vmax.xlane.f32.xlu1 %v1215_v28  ;;  %1213 = vmax.xlane.f32.xlu0 %v1212_v27  ;;  %v1218_v7 = vsel %vm1211_vm7, %v1105_v31, -inf  ;;  %v1221_v50 = vsel %vm1211_vm7, %v1106_v20, -inf  ;;  %v1209_v51 = vcombine.low %v1180_v40, %v1204_v46  ;;  %v1227_v54 = vsel %vm1211_vm7, %v1108_v58, -inf }
 0x143   : > { %v1206_v29 = vcombine.high %v1165_v13, %v1189_v23  ;;  %v1207_v48 = vcombine.low %v1172_v56, %v1196_v14  ;;  %v1205_v62 = vcombine.low %v1165_v13, %v1189_v23  ;;  %v1208_v43 = vcombine.high %v1172_v56, %v1196_v14 }
 0x144   : > { %v1242_v53 = vsel %vm1211_vm7, %v1209_v51, -inf  ;;  %v1210_v57 = vcombine.high %v1180_v40, %v1204_v46 }
 0x145   : > { %v1233_v47 = vsel %vm1211_vm7, %v1206_v29, -inf  ;;  %v1236_v49 = vsel %vm1211_vm7, %v1207_v48, -inf  ;;  %v1230_v59 = vsel %vm1211_vm7, %v1205_v62, -inf  ;;  %v1239_v4 = vsel %vm1211_vm7, %v1208_v43, -inf }
 0x146   : > { %1234 = vmax.xlane.f32.xlu1 %v1233_v47  ;;  %1219 = vmax.xlane.f32.xlu0 %v1218_v7  ;;  %v1245_v41 = vsel %vm1211_vm7, %v1210_v57, -inf }
 0x14a   : > { %1237 = vmax.xlane.f32.xlu1 %v1236_v49  ;;  %1231 = vmax.xlane.f32.xlu0 %v1230_v59 }
 0x14e   : > { %1240 = vmax.xlane.f32.xlu1 %v1239_v4  ;;  %1222 = vmax.xlane.f32.xlu0 %v1221_v50 }
 0x152   : > { %1243 = vmax.xlane.f32.xlu1 %v1242_v53  ;;  %1225 = vmax.xlane.f32.xlu0 %v1224_v26 }
 0x156   : > { %1228 = vmax.xlane.f32.xlu0 %v1227_v54 }
 0x15a   : > { %1246 = vmax.xlane.f32.xlu0 %v1245_v41 }
 0x1cf   : > { %v1217_v25 = vpop.xlane.xlu1 %1216  ;;  %v1214_v8 = vpop.xlane.xlu0 %1213 }
 0x1d0   : > { %v1269_v6 = vrot.slane %v1217_v25, %v1264_v5  ;;  %v1265_v9 = vrot.slane %v1214_v8, %v1264_v5 }
 0x1d2   : > { %v1310_v0 = vsel %vm871_vm2, %v1269_v6, %v1265_v9 }
 0x1d3   : > { %v1235_v60 = vpop.xlane.xlu1 %1234  ;;  %v1220_v63 = vpop.xlane.xlu0 %1219 }
 0x1d4   : > { %v1273_v10 = vrot.slane %v1220_v63, %v1264_v5  ;;  %v1293_v16 = vrot.slane %v1235_v60, %v1264_v5 }
 0x1d6   : > { %v1311_v19 = vsel %vm874_vm3, %v1273_v10, %v1310_v0 }
 0x1d7   : > { %v1238_v1 = vpop.xlane.xlu1 %1237  ;;  %v1232_v55 = vpop.xlane.xlu0 %1231 }
 0x1d8   : > { %v1289_v61 = vrot.slane %v1232_v55, %v1264_v5  ;;  %v1297_v22 = vrot.slane %v1238_v1, %v1264_v5 }
 0x1da   : > { %v1315_v35 = vsel %vm871_vm2, %v1293_v16, %v1289_v61 }
 0x1db   : > { %v1223_v2 = vpop.xlane.xlu0 %1222  ;;  %v1241_v52 = vpop.xlane.xlu1 %1240  ;;  %v1316_v42 = vsel %vm874_vm3, %v1297_v22, %v1315_v35 }
 0x1dc   : > { %v1277_v12 = vrot.slane %v1223_v2, %v1264_v5  ;;  %v1301_v30 = vrot.slane %v1241_v52, %v1264_v5 }
 0x1de   : > { %v1312_v37 = vsel %vm877_vm4, %v1277_v12, %v1311_v19  ;;  %v1317_v58 = vsel %vm877_vm4, %v1301_v30, %v1316_v42 }
 0x1df   : > { %v1226_v11 = vpop.xlane.xlu0 %1225  ;;  %v1244_v18 = vpop.xlane.xlu1 %1243 }
 0x1e0   : > { %v1281_v15 = vrot.slane %v1226_v11, %v1264_v5  ;;  %v1305_v38 = vrot.slane %v1244_v18, %v1264_v5 }
 0x1e2   : > { %v1313_v39 = vsel %vm880_vm5, %v1281_v15, %v1312_v37  ;;  %v1318_v45 = vsel %vm880_vm5, %v1305_v38, %v1317_v58 }
 0x1e3   : > { %v1229_v3 = vpop.xlane.xlu0 %1228 }
 0x1e4   : > { %v1285_v17 = vrot.slane %v1229_v3, %v1264_v5 }
 0x1e6   : > { %v1314_v24 = vsel %vm883_vm6, %v1285_v17, %v1313_v39 }
 0x1e7   : > { %1323 = vst.msk [vmem:[%s138_s26] sm:$0x3f] %vm1322_vm8, %v1314_v24  ;;  %v1247_v34 = vpop.xlane.xlu0 %1246 }
 0x1e8   : > { %v1309_v44 = vrot.slane %v1247_v34, %v1264_v5 }
 0x1ea   : > { %v1319_v32 = vsel %vm883_vm6, %v1309_v44, %v1318_v45 }
 0x1eb   : > { %1324 = vst.msk [vmem:[%s138_s26 + $0x8] sm:$0x3f] %vm1322_vm8, %v1319_v32 }
 0x1ec PF: > { %p11_p8 = scmp.ge.s32.totalorder %s1570_s11, 6   ;;  %s2096_s6 = smov %s1518_s7 }
 0x1ed   : > { %s2097_s7 = smov %s1522_s8  ;;  %s2098_s8 = smov %s1580_s14 }
 0x1ee   : > { %s2099_s9 = smov %s1570_s11  ;;  %13 = sbr.rel (!%p11_p8) target bundleno = 3 (0x3), region = 64 }
 0x1f5   :  { %1347 = vsyncpa [#allocation3], 1 }
 0x1f6   :  { %1349 = vsyncpa [#allocation3 + $0x1], 1 }

</bundles_post_ra>
